<compile_context>
chip_gen: v5e
topology: v5e:2x2
jax: 0.10.0
libtpu: 0.0.40
codegen_flags: <defaults>
</compile_context>

<pallas_src>
import functools
import math

import jax
import jax.numpy as jnp
from jax.experimental import pallas as pl
from jax.experimental.pallas import tpu as pltpu

_NEG_BIG = -1e30  # finite "minus infinity" for the additive mask bias


def _vmem_limit(needed_bytes):
    # 25% headroom + 2 MiB for compiler internals; floor 16 MiB; cap 48 MiB so
    # the request stays inside v7x's 64 MiB/TC (v5e/v6e have 128 MiB).
    return int(min(max(needed_bytes * 5 // 4 + (2 << 20), 16 << 20), 48 << 20))


# ----------------------- kernel 1: fused QKV projection -----------------------
def _qkv_proj_kernel(x_ref, w_ref, qkv_ref, *, mxu_dtype):
    x = x_ref[...].astype(mxu_dtype)                 # bf16 MXU operands
    qkv = jnp.dot(x, w_ref[...], preferred_element_type=jnp.float32)
    qkv_ref[...] = qkv.astype(qkv_ref.dtype)


def _qkv_projection(x, w_qkv_t, tm, mxu_dtype):
    B, T, D = x.shape
    D3 = w_qkv_t.shape[1]
    isz_in = jnp.dtype(x.dtype).itemsize
    isz_mx = jnp.dtype(mxu_dtype).itemsize
    needed = (2 * tm * D * isz_in          # x tiles (double-buffered)
              + 2 * D * D3 * isz_mx        # resident weight (default 2 bufs)
              + 2 * tm * D3 * isz_mx)      # output tiles
    return pl.pallas_call(
        functools.partial(_qkv_proj_kernel, mxu_dtype=mxu_dtype),
        out_shape=jax.ShapeDtypeStruct((B, T, D3), mxu_dtype),
        grid_spec=pltpu.PrefetchScalarGridSpec(
            num_scalar_prefetch=0,
            grid=(B, T // tm),
            in_specs=[
                pl.BlockSpec((None, tm, D), lambda b, i: (b, i, 0)),
                pl.BlockSpec((D, D3), lambda b, i: (0, 0)),   # VMEM-resident
            ],
            out_specs=pl.BlockSpec((None, tm, D3), lambda b, i: (b, i, 0)),
        ),
        compiler_params=pltpu.CompilerParams(
            dimension_semantics=("parallel", "parallel"),
            vmem_limit_bytes=_vmem_limit(needed)),
    )(x, w_qkv_t)


# -------------------------- kernel 2: flash attention --------------------------
def _flash_attn_kernel(active_ref, q_ref, k_ref, v_ref, bias_ref, o_ref,
                       m_scr, l_scr, acc_scr):
    qi = pl.program_id(1)
    ki = pl.program_id(2)
    nk = pl.num_programs(2)

    @pl.when(ki == 0)
    def _():
        m_scr[...] = jnp.full(m_scr.shape, _NEG_BIG, m_scr.dtype)
        l_scr[...] = jnp.zeros(l_scr.shape, l_scr.dtype)
        acc_scr[...] = jnp.zeros(acc_scr.shape, acc_scr.dtype)

    @pl.when(active_ref[qi, ki] != 0)        # skip fully-masked KV tiles
    def _():
        q = q_ref[...]                        # (H, tq, hs)
        k = k_ref[...]                        # (H, tkv, hs)
        v = v_ref[...]                        # (H, tkv, hs)
        s = jnp.einsum("hqd,hkd->hqk", q, k,
                       preferred_element_type=jnp.float32)        # (H, tq, tkv)
        s = s + bias_ref[...].astype(jnp.float32)[None, :, :]
        m_prev = m_scr[...]                                       # (H, tq, 1)
        m_new = jnp.maximum(m_prev, jnp.max(s, axis=-1, keepdims=True))
        alpha = jnp.exp(m_prev - m_new)
        p = jnp.exp(s - m_new)                                    # (H, tq, tkv)
        # one full-width store each for l / acc / m per kv step (lane-dense)
        l_scr[...] = alpha * l_scr[...] + jnp.sum(p, axis=-1, keepdims=True)
        pv = jnp.einsum("hqk,hkd->hqd", p.astype(v.dtype), v,
                        preferred_element_type=jnp.float32)       # (H, tq, hs)
        acc_scr[...] = alpha * acc_scr[...] + pv
        m_scr[...] = m_new

    @pl.when(ki == nk - 1)
    def _():
        inv_l = pl.reciprocal(l_scr[...], approx=True)            # EUP slot
        o_ref[...] = (acc_scr[...] * inv_l).astype(o_ref.dtype)


def _flash_attention(q, k, v, bias_mask, tile_active, tq, tkv):
    B, H, T, hs = q.shape
    nq, nk = T // tq, T // tkv
    isz = jnp.dtype(q.dtype).itemsize
    needed = (2 * H * tq * hs * isz           # q tiles
              + 4 * H * tkv * hs * isz        # k + v tiles
              + 2 * tq * tkv * 2              # bf16 mask bias tiles
              + 2 * H * tq * hs * isz         # output tiles
              + H * tq * (hs + 2) * 4)        # f32 scratch (m, l, acc)
    cost = pl.CostEstimate(
        flops=int(4 * B * H * T * T * hs),
        transcendentals=int(B * H * T * T),
        bytes_accessed=int(4 * B * H * T * hs * isz + T * T * 2))
    return pl.pallas_call(
        _flash_attn_kernel,
        out_shape=jax.ShapeDtypeStruct((B, H, T, hs), q.dtype),
        grid_spec=pltpu.PrefetchScalarGridSpec(
            num_scalar_prefetch=1,            # tile_active -> SMEM
            grid=(B, nq, nk),
            in_specs=[
                pl.BlockSpec((None, H, tq, hs),
                             lambda b, qi, ki, act: (b, 0, qi, 0)),
                pl.BlockSpec((None, H, tkv, hs),
                             lambda b, qi, ki, act: (b, 0, ki, 0)),
                pl.BlockSpec((None, H, tkv, hs),
                             lambda b, qi, ki, act: (b, 0, ki, 0)),
                pl.BlockSpec((tq, tkv), lambda b, qi, ki, act: (qi, ki)),
            ],
            out_specs=pl.BlockSpec((None, H, tq, hs),
                                   lambda b, qi, ki, act: (b, 0, qi, 0)),
            scratch_shapes=[
                pltpu.VMEM((H, tq, 1), jnp.float32),   # running max
                pltpu.VMEM((H, tq, 1), jnp.float32),   # running denom
                pltpu.VMEM((H, tq, hs), jnp.float32),  # output accumulator
            ],
        ),
        compiler_params=pltpu.CompilerParams(
            dimension_semantics=("parallel", "parallel", "arbitrary"),
            vmem_limit_bytes=_vmem_limit(needed)),
        cost_estimate=cost,
    )(tile_active, q, k, v, bias_mask)


# ------------------------- kernel 3: output projection -------------------------
def _out_proj_kernel(x_ref, w_ref, b_ref, o_ref, *, mxu_dtype):
    x = x_ref[...].astype(mxu_dtype)
    out = jnp.dot(x, w_ref[...], preferred_element_type=jnp.float32)
    out = out + b_ref[...]
    o_ref[...] = out.astype(o_ref.dtype)


def _out_projection(ctx, wo_t, bo2d, tm, out_dtype, mxu_dtype):
    B, T, D = ctx.shape
    isz_c = jnp.dtype(ctx.dtype).itemsize
    isz_m = jnp.dtype(mxu_dtype).itemsize
    isz_o = jnp.dtype(out_dtype).itemsize
    needed = (2 * tm * D * isz_c + 2 * D * D * isz_m + 2 * D * 4
              + 2 * tm * D * isz_o)
    return pl.pallas_call(
        functools.partial(_out_proj_kernel, mxu_dtype=mxu_dtype),
        out_shape=jax.ShapeDtypeStruct((B, T, D), out_dtype),
        grid_spec=pltpu.PrefetchScalarGridSpec(
            num_scalar_prefetch=0,
            grid=(B, T // tm),
            in_specs=[
                pl.BlockSpec((None, tm, D), lambda b, i: (b, i, 0)),
                pl.BlockSpec((D, D), lambda b, i: (0, 0)),     # resident
                pl.BlockSpec((1, D), lambda b, i: (0, 0)),     # bias
            ],
            out_specs=pl.BlockSpec((None, tm, D), lambda b, i: (b, i, 0)),
        ),
        compiler_params=pltpu.CompilerParams(
            dimension_semantics=("parallel", "parallel"),
            vmem_limit_bytes=_vmem_limit(needed)),
    )(ctx, wo_t, bo2d)


# --------------------------------- wrapper ---------------------------------
def multi_head_attention(x, mask, wq, wk, wv, wo, bo, *,
                         q_tile=256, kv_tile=256, proj_tile=256,
                         mxu_dtype=jnp.bfloat16):
    """x: (B,T,D), mask: (T,T) 1=keep/0=mask, wq/wk/wv: (H,hs,D) (PyTorch
    Linear layout, out x in), wo: (D,D), bo: (D,)."""
    B, T, D = x.shape
    H, hs, D2 = wq.shape
    assert D2 == D and H * hs == D

    tq = min(q_tile, T)
    tkv = min(kv_tile, T)
    tm = min(proj_tile, T)
    assert T % tq == 0 and T % tkv == 0 and T % tm == 0

    scale = 1.0 / math.sqrt(hs)
    # One wide (D, 3D) projection weight; 1/sqrt(hs) folded into the Q slice.
    w_qkv_t = jnp.concatenate(
        [wq.reshape(D, D) * scale, wk.reshape(D, D), wv.reshape(D, D)],
        axis=0).T.astype(mxu_dtype)                               # (D, 3D)
    wo_t = wo.T.astype(mxu_dtype)                                 # (D, D)
    bo2d = bo.reshape(1, D).astype(jnp.float32)

    # Additive mask bias (0 keep / -1e30 masked); bf16 halves DMA traffic.
    bias_mask = jnp.where(mask == 0, _NEG_BIG, 0.0).astype(jnp.bfloat16)
    nq, nk = T // tq, T // tkv
    tile_active = (mask.reshape(nq, tq, nk, tkv) != 0).any(
        axis=(1, 3)).astype(jnp.int32)                            # (nq, nk)

    # 1) fused QKV projection (K/V computed exactly once).
    qkv = _qkv_projection(x, w_qkv_t, tm, mxu_dtype)              # (B, T, 3D)

    # Layout plumbing (one-time XLA transpose): head-major Q/K/V so attention
    # blocks are lane-dense and never slice heads out of a packed last dim.
    qkv = qkv.reshape(B, T, 3, H, hs).transpose(2, 0, 3, 1, 4)    # (3,B,H,T,hs)
    q, k, v = qkv[0], qkv[1], qkv[2]

    # 2) flash attention with online softmax + masked-tile skipping.
    ctx = _flash_attention(q, k, v, bias_mask, tile_active, tq, tkv)

    # Back to (B, T, D) concat-of-heads layout for the output projection.
    ctx = ctx.transpose(0, 2, 1, 3).reshape(B, T, D)

    # 3) output projection (+ bias).
    return _out_projection(ctx, wo_t, bo2d, tm, x.dtype, mxu_dtype)


# -------------------------------- reference --------------------------------
def mha_reference(x, mask, wq, wk, wv, wo, bo):
    """Pure-JAX reference matching the PyTorch module semantics."""
    H, hs, D = wq.shape
    head_outs = []
    for h in range(H):
        q = x @ wq[h].T
        k = x @ wk[h].T
        v = x @ wv[h].T
        scores = (q @ jnp.swapaxes(k, -2, -1)) / (hs ** 0.5)
        scores = jnp.where(mask == 0, -jnp.inf, scores)
        w = jax.nn.softmax(scores, axis=-1)
        head_outs.append(w @ v)
    concat = jnp.concatenate(head_outs, axis=-1)
    return concat @ wo.T + bo


if __name__ == "__main__":
    B, T, D, H = 2, 8, 32, 4
    hs = D // H

    key = jax.random.PRNGKey(0)
    kx, kq, kk, kv_, kw, kb = jax.random.split(key, 6)

    x = jax.random.normal(kx, (B, T, D), dtype=jnp.float32)
    # causal mask (1 = attend, 0 = masked)
    mask = jnp.tril(jnp.ones((T, T), dtype=jnp.float32))

    bound = 1.0 / math.sqrt(D)
    wq = jax.random.uniform(kq, (H, hs, D), minval=-bound, maxval=bound,
                            dtype=jnp.float32)
    wk = jax.random.uniform(kk, (H, hs, D), minval=-bound, maxval=bound,
                            dtype=jnp.float32)
    wv = jax.random.uniform(kv_, (H, hs, D), minval=-bound, maxval=bound,
                            dtype=jnp.float32)
    wo = jax.random.uniform(kw, (D, D), minval=-bound, maxval=bound,
                            dtype=jnp.float32)
    bo = jax.random.uniform(kb, (D,), minval=-bound, maxval=bound,
                            dtype=jnp.float32)

    ref = mha_reference(x, mask, wq, wk, wv, wo, bo)

    # Default path: bf16 MXU operands, f32 accumulation (production recipe).
    out = multi_head_attention(x, mask, wq, wk, wv, wo, bo)
    out = jax.block_until_ready(out)
    assert out.shape == (B, T, D)
    assert jnp.allclose(out, ref, atol=5e-2, rtol=5e-2), \
        "bf16-MXU mismatch vs reference"

    # Full-f32 MXU path for tighter parity (tolerance covers approx recip).
    out_f32 = multi_head_attention(x, mask, wq, wk, wv, wo, bo,
                                   mxu_dtype=jnp.float32)
    out_f32 = jax.block_until_ready(out_f32)
    assert jnp.allclose(out_f32, ref, atol=1e-2, rtol=1e-2), \
        "f32-MXU mismatch vs reference"

    print("KERNEL_OK")
</pallas_src>

<mosaic_0001>
module attributes {stable_mosaic.version = 11 : i64} {
  func.func @_qkv_proj_kernel(%arg0: i32, %arg1: i32, %arg2: memref<1x8x32xf32, #tpu.memory_space<vmem>>, %arg3: memref<32x96xbf16, #tpu.memory_space<vmem>>, %arg4: memref<1x8x96xbf16, #tpu.memory_space<vmem>>) attributes {dimension_semantics = [#tpu.dimension_semantics<parallel>, #tpu.dimension_semantics<parallel>], iteration_bounds = array<i64: 2, 1>, scalar_prefetch = 0 : i64, scratch_operands = 0 : i64, tpu.core_type = #tpu.core_type<tc>, window_params = [{transform_indices = @transform_0, window_bounds = array<i64: 1, 8, 32>}, {pipeline_mode = #tpu.pipeline_mode<synchronous>, transform_indices = @transform_1, window_bounds = array<i64: 32, 96>}, {transform_indices = @transform_2, window_bounds = array<i64: 1, 8, 96>}]} {
    %c0 = arith.constant 0 : index
    %c0_0 = arith.constant 0 : index
    %c0_1 = arith.constant 0 : index
    %0 = vector.load %arg2[%c0, %c0_0, %c0_1] : memref<1x8x32xf32, #tpu.memory_space<vmem>>, vector<1x8x32xf32>
    %1 = vector.shape_cast %0 : vector<1x8x32xf32> to vector<8x32xf32>
    %2 = arith.truncf %1 : vector<8x32xf32> to vector<8x32xbf16>
    %c0_2 = arith.constant 0 : index
    %c0_3 = arith.constant 0 : index
    %3 = vector.load %arg3[%c0_2, %c0_3] : memref<32x96xbf16, #tpu.memory_space<vmem>>, vector<32x96xbf16>
    %cst = arith.constant dense<0.000000e+00> : vector<8x96xf32>
    %4 = tpu.matmul %2, %3, %cst {dimension_numbers = #tpu.dot_dimension_numbers<[1], [0], [0], [1], [0, 0, 1, 1], [], []>} : vector<8x32xbf16>, vector<32x96xbf16>, vector<8x96xf32> -> vector<8x96xf32>
    %5 = arith.truncf %4 : vector<8x96xf32> to vector<8x96xbf16>
    %c0_4 = arith.constant 0 : index
    %c0_5 = arith.constant 0 : index
    %c0_6 = arith.constant 0 : index
    %6 = vector.load %arg4[%c0_4, %c0_5, %c0_6] : memref<1x8x96xbf16, #tpu.memory_space<vmem>>, vector<1x8x96xbf16>
    %7 = vector.shape_cast %6 : vector<1x8x96xbf16> to vector<8x96xbf16>
    %8 = vector.shape_cast %5 : vector<8x96xbf16> to vector<1x8x96xbf16>
    tpu.vector_store %arg4[%c0_4, %c0_5, %c0_6], %8 {strides = array<i32>} : memref<1x8x96xbf16, #tpu.memory_space<vmem>>, vector<1x8x96xbf16>,
    return
  }
  func.func @transform_0(%arg0: i32, %arg1: i32) -> (i32, i32, i32) {
    %c0_i32 = arith.constant 0 : i32
    %c0_i32_0 = arith.constant 0 : i32
    return %arg0, %arg1, %c0_i32 : i32, i32, i32
  }
  func.func @transform_1(%arg0: i32, %arg1: i32) -> (i32, i32) {
    %c0_i32 = arith.constant 0 : i32
    %c0_i32_0 = arith.constant 0 : i32
    %c0_i32_1 = arith.constant 0 : i32
    return %c0_i32, %c0_i32_0 : i32, i32
  }
  func.func @transform_2(%arg0: i32, %arg1: i32) -> (i32, i32, i32) {
    %c0_i32 = arith.constant 0 : i32
    %c0_i32_0 = arith.constant 0 : i32
    return %arg0, %arg1, %c0_i32 : i32, i32, i32
  }
}

</mosaic_0001>

<bundles_post_ra>
// kernel: tpu_custom_call.1
= control target key start
LH: loop header
LB: loop body
LE: loop exit
PB: predicated region body
PF: predicated region fallthrough
CT: control target
= control target key end

     0   :  { %7 = vsyncpa [#allocation3], 0  ;;  %s752_s0 = inlined_call_operand.hbm [shape: f32[2,8,32], index: 0, kind: input, shape index: {}]   ;;  %s753_s1 = inlined_call_operand.hbm [shape: bf16[32,96], index: 1, kind: input, shape index: {}]   ;;  %s754_s2 = inlined_call_operand.hbm [shape: bf16[2,8,96], index: 2, kind: output, shape index: {}]  }
   0x1   :  { %9 = vsyncpa [#allocation3 + $0x1], 0 }
   0x2   :  { %10 = vsyncpa [#allocation6], 0 }
   0x3   :  { %11 = vsyncpa [#allocation4], 0 }
   0x4   :  { %13 = vsyncpa [#allocation4 + $0x1], 0  ;;  %s608_s9 = smov 0   ;;  %s610_s10 = smov 0  }
   0x5   :  { %s612_s11 = smov 0   ;;  %s614_s12 = smov 0  }
   0x6   :  { %s616_s13 = smov 0   ;;  %s618_s14 = smov 0  }
   0x7 LB: > { %s341_s15 = sadd.s32 4294967295, %s588_s14   ;;  %p343_p0 = scmp.ge.s32.totalorder %s588_s14, 1  ;;  %s588_s14 = sphi %s618_s14, %s19_s14   ;;  %s584_s13 = sphi %s616_s13, %s765_s13   ;;  %s580_s12 = sphi %s614_s12, %s764_s12   ;;  %s576_s11 = sphi %s612_s11, %s763_s11   ;;  %s572_s10 = sphi %s610_s10, %s762_s10   ;;  %s568_s9 = sphi %s608_s9, %s761_s9  }
   0x8   : > { %p640_p1 = scmp.eq.s32.totalorder %s341_s15, 0  ;;  %p113_p2 = scmp.lt.s32.totalorder %s588_s14, 3 }
   0x9   : > { %s124_s19 = sshll.u32 %s753_s1, 4  ;;  %s590_s21 = smov [#allocation5]   ;;  %s125_s19 = int_to_ptr.hbm [resolvable:$true] %s124_s19 }
   0xa   : > { %p648_p3 = pnand %p343_p0, %p113_p2  ;;  %s126_s22 = sshll.u32 %s590_s21, 4  ;;  %s127_s22 = int_to_ptr.vmem [resolvable:$true] %s126_s22 }
   0xb   : > { %p345_p6 = scmp.ge.s32.totalorder %s588_s14, 2  ;;  %s591_s23 = smov 64  }
   0xc   : > { %p375_p4 = pneg %p648_p3  ;;  %s592_s24 = smov 4  }
   0xd   : > { %s342_s25 = sadd.s32 4294967294, %s588_s14   ;;  %s31_s26 = sadd.s32 1, %s584_s13 }
   0xe   : > { %p376_p5 = pnand %p375_p4, %p640_p1  ;;  %s40_s27 = sadd.s32 1, %s576_s11 }
   0xf   : > { %p33_p7 = scmp.ge.s32.totalorder %s31_s26, 2  ;;  %p47_p8 = scmp.ne.s32.totalorder %s576_s11, %s572_s10 }
  0x10   : > { %378 = dma.hbm_to_vmem [thread:$0]  (!%p376_p5), %s125_s19, 256, %s127_s22, [#allocation6], %s591_s23, %s591_s23, %s592_s24  }
  0x11   : > { %p48_p9 = scmp.eq.s32.totalorder %s588_s14, 0  ;;  %p53_p10 = scmp.ne.s32.totalorder %s572_s10, %s568_s9 }
  0x12   : > { %s767_s26 = smov (%p33_p7, %s31_s26), 0  ;;  %p100_p13 = scmp.eq.s32.totalorder %s341_s15, 1 }
  0x13   : > { %p667_p11 = por %p48_p9, %p47_p8  ;;  %p673_p12 = por %p640_p1, %p53_p10 }
  0x14   : > { %s35_s30 = ssub.s32 %s584_s13, %s767_s26  ;;  %p106_p2 = scmp.eq.s32.totalorder %s342_s25, 1 }
  0x15   : > { %p38_p0 = scmp.eq.s32.totalorder %s35_s30, 0  ;;  %p679_p4 = por %p100_p13, %p47_p8 }
  0x16   : > { %p388_p5 = scmp.lt.s32.totalorder %s588_s14, 2  ;;  %p687_p7 = por %p106_p2, %p53_p10 }
  0x17   : > { %s685_s4 = scalar_select %p38_p0, %s576_s11, %s40_s27  }
  0x18   : > { %s140_s6 = sand.u32 1, %s576_s11   ;;  %s347_s8 = sshll.u32 %s584_s13, 3 }
  0x19   : > { %s346_s7 = sshll.u32 %s140_s6, 3  ;;  %s149_s15 = scalar_lea.hbm %s752_s0, %s347_s8 }
  0x1a   : > { %s144_s19 = scalar_lea.vmem [#allocation2], %s346_s7  ;;  %s151_s22 = sshll.u32 %s149_s15, 4  ;;  %s152_s22 = int_to_ptr.hbm [resolvable:$true] %s151_s22 }
  0x1b   : > { %s153_s21 = sshll.u32 %s144_s19, 4  ;;  %p380_p8 = pnand %p388_p5, %p667_p11  ;;  %s154_s21 = int_to_ptr.vmem [resolvable:$true] %s153_s21 }
  0x1c   : > { %s141_s23 = scalar_lea.sflag [#allocation3], %s140_s6  ;;  %162 = sbr.rel (%p648_p3) target bundleno = 178 (0xb2), region = 28 }
  0x1d   : > { %382 = dma.hbm_to_vmem [thread:$0]  (!%p380_p8), %s152_s22, 128, %s154_s21, %s141_s23  }
  0x1e   : > { %s701_s24 = sand.u32 (!%p648_p3), 1, %s572_s10  }
  0x1f   : > { %s349_s25 = sshll.u32 (!%p648_p3), %s701_s24, 3  ;;  %s165_s27 = scalar_lea.sflag (!%p648_p3), [#allocation3], %s701_s24 }
  0x20   : > { %s168_s30 = scalar_lea.vmem (!%p648_p3), [#allocation2], %s349_s25 }
  0x21   : > { %555 = dma.done.wait (%p673_p12), %s165_s27, 128  }
  0x22   : > { %557 = vsyncadd (%p673_p12), %s165_s27, 4294967168 }
  0x23   : > { %559 = dma.done.wait (%p640_p1), [#allocation6], 256  }
  0x24   : > { %561 = vsyncadd (%p640_p1), [#allocation6], 4294967040  ;;  %v366_v0 = vld [vmem:[#allocation5 + $0x8] sm:$0xff]  ;;  %v365_v1 = vld [vmem:[#allocation5] sm:$0xff]  ;;  %vm214_vm0 = vcmask 261120   ;;  %s362_s20 = sshll.u32 %s580_s12, 2 }
  0x25   : > { %224 = vmatpush.bf16.msra.mxu0 %v366_v0  ;;  %v196_v2 = vld [vmem:[%s168_s30] sm:$0xff]  ;;  %s351_s28 = sshll.u32 %s701_s24, 2  ;;  %s246_s7 = scalar_lea.hbm %s754_s2, %s362_s20  ;;  %vm232_vm1 = vcmask 781312  }
  0x26   : > { %v197_v3 = vpack.c.bf16 %v196_v2, %v196_v2  ;;  %s194_s16 = scalar_lea.vmem [#allocation7], %s351_s28  ;;  %s250_s17 = sshll.u32 %s246_s7, 4  ;;  %s251_s17 = int_to_ptr.hbm [resolvable:$true] %s250_s17 }
  0x27   : > { %s248_s8 = sshll.u32 %s194_s16, 4  ;;  %s235_s18 = scalar_lea.sflag [#allocation4], %s701_s24  ;;  %s249_s8 = int_to_ptr.vmem [resolvable:$true] %s248_s8 }
  0x28   : > { %s516_s15 = sshra.s32 %s251_s17, 4  ;;  %s522_s22 = scalar_lea.hbm %s754_s2, 8  ;;  %s517_s15 = int_to_ptr.hbm [resolvable:$true] %s516_s15 }
  0x29   : > { %225 = vmatpush.bf16.msra.mxu0 %v365_v1  ;;  %s518_s19 = scalar_lea.hbm %s517_s15, 4  ;;  %p523_p10 = scmp.lt.s32.totalorder %s517_s15, %s754_s2 }
  0x2a   : > { %p519_p1 = scmp.ne.s32.totalorder %s517_s15, %s518_s19  ;;  %p524_p11 = scmp.lt.s32.totalorder %s522_s22, %s518_s19 }
  0x2c   : > { %360 = vmatmul.msk.bf16.vlgmr.msra.gmra.mxu0 %vm214_vm0, %v197_v3  ;;  %p520_p3 = pnand %p519_p1, %p679_p4  ;;  %p525_p12 = por %p524_p11, %p523_p10 }
  0x2e   : > { %p521_p9 = pneg %p520_p3 }
  0x30   : > { %p526_p13 = pnand %p525_p12, %p521_p9 }
  0xa9   : > { %v227_v4 = vpop.f32.mrf.mxu0 }
  0xaa   : > { %v231_v5 = vpack.c.bf16 %v227_v4, %v227_v4 }
  0xac   : > { %233 = vst.msk [vmem:[%s194_s16] sm:$0xf] %vm232_vm1, %v231_v5 }
  0xad   : > { %529 = shalt.err (!%p526_p13)
}
  0xae   : > { %373 = dma.vmem_to_hbm [thread:$0]  (%p679_p4), %s249_s8, 64, %s251_s17, %s235_s18  }
  0xb1   : > { %v229_v6 = vpop.f32.mrf.mxu0 }
  0xb2 PF: > { %s262_s24 = sand.u32 1, %s568_s9   ;;  %p384_p0 = pnand %p345_p6, %p687_p7 }
  0xb3   : > { %s263_s27 = scalar_lea.sflag [#allocation4], %s262_s24 }
  0xb4   : > { %p385_p2 = pneg %p384_p0 }
  0xb6   : > { %563 = dma.done.wait (%p385_p2), %s263_s27, 64  }
  0xb7   : > { %565 = vsyncadd (%p385_p2), %s263_s27, 4294967232  ;;  %s19_s14 = sadd.s32 1, %s588_s14   ;;  %s761_s9 = smov %s572_s10 }
  0xb8   : > { %p16_p5 = scmp.ge.s32.totalorder %s19_s14, 4   ;;  %s762_s10 = smov %s576_s11 }
  0xb9   : > { %s763_s11 = smov %s685_s4  ;;  %s764_s12 = smov %s584_s13 }
  0xba   : > { %s765_s13 = smov %s767_s26  ;;  %18 = sbr.rel (!%p16_p5) target bundleno = 7 (0x7), region = 77 }
  0xbf   :  { %269 = vsyncpa [#allocation3], 1 }
  0xc0   :  { %271 = vsyncpa [#allocation3 + $0x1], 1 }
  0xc1   :  { %272 = vsyncpa [#allocation6], 1 }
  0xc2   :  { %273 = vsyncpa [#allocation4], 1 }
  0xc3   :  { %275 = vsyncpa [#allocation4 + $0x1], 1 }

</bundles_post_ra>
